<compile_context>
chip_gen: v7x
topology: tpu7x:2x2x1
jax: 0.10.0
libtpu: 0.0.40
codegen_flags: <defaults>
</compile_context>

<pallas_src>
import functools
from math import ceil, floor

import numpy as np
import jax
import jax.numpy as jnp
from jax.experimental import pallas as pl
from jax.experimental.pallas import tpu as pltpu


def _level_params(H, W, level):
    """Replicates the PyTorch SPP kernel/stride/padding/output-size math."""
    kh, kw = ceil(H / level), ceil(W / level)
    sh, sw = kh, kw
    ph = floor((kh * level - H + 1) / 2)
    pw = floor((kw * level - W + 1) / 2)
    # ceil_mode=False output size of F.max_pool2d / F.avg_pool2d
    oh = (H + 2 * ph - kh) // sh + 1
    ow = (W + 2 * pw - kw) // sw + 1
    return kh, kw, sh, sw, ph, pw, oh, ow


def _coverage_matrix(H, W, level_num):
    """(H*W, total_cells) 0/1 matrix: entry = 1 iff the pixel lies inside the
    valid (unpadded) part of that cell's pooling window.  Entries are kept
    exactly 0/1 so the MXU matmul is exact; the 1/(kh*kw) divisor
    (count_include_pad=True) is returned as a separate f32 column scale."""
    params = [_level_params(H, W, i + 1) for i in range(level_num)]
    total_cells = sum(p[6] * p[7] for p in params)
    P = np.zeros((H * W, total_cells), dtype=np.float32)
    scale = np.zeros((1, total_cells), dtype=np.float32)
    col = 0
    for (kh, kw, sh, sw, ph, pw, oh, ow) in params:
        inv = 1.0 / float(kh * kw)
        for p in range(oh):
            for q in range(ow):
                h0, w0 = p * sh - ph, q * sw - pw
                hs, he = max(h0, 0), min(h0 + kh, H)
                ws, we = max(w0, 0), min(w0 + kw, W)
                for h in range(hs, he):
                    P[h * W + ws:h * W + we, col] = 1.0
                scale[0, col] = inv
                col += 1
    return P, scale


# TODO(synk): for very large level_num, cap the trace-time unrolling of the
# per-level loops (e.g. lax.fori_loop over cells) to keep code size bounded.
def _spp_max_kernel(x_ref, o_ref, *, H, W, level_num):
    """x_ref: (row_tile, H, W); o_ref: (row_tile, total_cells)."""
    x = x_ref[...]
    parts = []
    for i in range(level_num):
        kh, kw, sh, sw, ph, pw, oh, ow = _level_params(H, W, i + 1)
        # Separable pooling: reduce W first (ow lane-span reductions), then H.
        # Max over the clipped valid window == -inf-padded max_pool2d.
        cols = []
        for q in range(ow):
            w0 = q * sw - pw
            ws, we = max(w0, 0), min(w0 + kw, W)
            cols.append(jnp.max(x[:, :, ws:we], axis=-1, keepdims=True))
        colmat = jnp.concatenate(cols, axis=-1)            # (TR, H, ow)
        rows = []
        for p in range(oh):
            h0 = p * sh - ph
            hs, he = max(h0, 0), min(h0 + kh, H)
            rows.append(jnp.max(colmat[:, hs:he, :], axis=1, keepdims=True))
        lvl = jnp.concatenate(rows, axis=1)                # (TR, oh, ow)
        parts.append(lvl.reshape(lvl.shape[0], oh * ow))   # (p, q) cell order
    # Single lane-contiguous store of the whole row-tile result.
    o_ref[...] = jnp.concatenate(parts, axis=-1).astype(o_ref.dtype)


def _spp_avg_kernel(x_ref, p_ref, s_ref, o_ref):
    """x_ref: (row_tile, H*W) lane-dense; p_ref: (H*W, cells) 0/1 coverage;
    s_ref: (1, cells) per-cell 1/(kh*kw); o_ref: (row_tile, cells)."""
    x = x_ref[...].astype(jnp.float32)                     # f32 accumulation
    pooled = jnp.dot(x, p_ref[...],
                     preferred_element_type=jnp.float32,
                     precision=jax.lax.Precision.HIGHEST)  # (TR, cells)
    o_ref[...] = (pooled * s_ref[...]).astype(o_ref.dtype)


def spp_pallas(x, level_num, pool_type='max_pool'):
    N, C, H, W = x.shape
    params = [_level_params(H, W, i + 1) for i in range(level_num)]
    total_cells = sum(p[6] * p[7] for p in params)
    R = N * C

    # Row tile: ~2 MiB of input per step (double-buffered by the pipeline),
    # multiple of 8 when tiling so output blocks stay layout-legal.
    row_bytes = H * W * x.dtype.itemsize
    target = max(1, (2 << 20) // row_bytes)
    tr = R if target >= R else max(8, (target // 8) * 8)
    grid = (pl.cdiv(R, tr),)
    cp = pltpu.CompilerParams(dimension_semantics=("parallel",))

    cells_shape = jax.ShapeDtypeStruct((R, total_cells), x.dtype)
    out_spec = pl.BlockSpec((tr, total_cells), lambda r: (r, 0))

    if pool_type == 'max_pool':
        x_rows = x.reshape(R, H, W)
        kernel = functools.partial(_spp_max_kernel, H=H, W=W,
                                   level_num=level_num)
        cells = pl.pallas_call(
            kernel,
            out_shape=cells_shape,
            grid=grid,
            in_specs=[pl.BlockSpec((tr, H, W), lambda r: (r, 0, 0))],
            out_specs=out_spec,
            compiler_params=cp,
        )(x_rows)
    else:
        pmat_np, scale_np = _coverage_matrix(H, W, level_num)
        x_rows = x.reshape(R, H * W)                       # lane-dense for MXU
        cells = pl.pallas_call(
            _spp_avg_kernel,
            out_shape=cells_shape,
            grid=grid,
            in_specs=[pl.BlockSpec((tr, H * W), lambda r: (r, 0)),
                      pl.BlockSpec((H * W, total_cells), lambda r: (0, 0)),
                      pl.BlockSpec((1, total_cells), lambda r: (0, 0))],
            out_specs=out_spec,
            compiler_params=cp,
        )(x_rows, jnp.asarray(pmat_np), jnp.asarray(scale_np))

    # Layout plumbing only: restore torch's view(N,-1) per-level order
    # result = concat_l [ (N, C*oh_l*ow_l) ]  (contiguous slices + reshapes).
    cells3 = cells.reshape(N, C, total_cells)
    chunks, off = [], 0
    for (kh, kw, sh, sw, ph, pw, oh, ow) in params:
        nc = oh * ow
        chunks.append(cells3[:, :, off:off + nc].reshape(N, C * nc))
        off += nc
    return jnp.concatenate(chunks, axis=1)


def spp_reference(x, level_num, pool_type='max_pool'):
    """Pure-JAX reference with identical PyTorch semantics (for checking)."""
    N, C, H, W = x.shape
    outs = []
    for i in range(level_num):
        kh, kw, sh, sw, ph, pw, oh, ow = _level_params(H, W, i + 1)
        cells = []
        for p in range(oh):
            for q in range(ow):
                h0, w0 = p * sh - ph, q * sw - pw
                hs, he = max(h0, 0), min(h0 + kh, H)
                ws, we = max(w0, 0), min(w0 + kw, W)
                win = x[:, :, hs:he, ws:we]
                if pool_type == 'max_pool':
                    cells.append(jnp.max(win, axis=(2, 3)))
                else:
                    cells.append(jnp.sum(win, axis=(2, 3)) / float(kh * kw))
        outs.append(jnp.stack(cells, axis=-1).reshape(N, C * oh * ow))
    return jnp.concatenate(outs, axis=1)


if __name__ == "__main__":
    key = jax.random.PRNGKey(0)
    x = jax.random.normal(key, (2, 4, 16, 16), dtype=jnp.float32)
    level_num = 3
    expected_cols = 4 * (1 + 4 + 9)

    # max_pool path (module default): exact.
    out_max = jax.block_until_ready(spp_pallas(x, level_num, 'max_pool'))
    ref_max = spp_reference(x, level_num, 'max_pool')
    assert out_max.shape == (2, expected_cols), out_max.shape
    assert jnp.allclose(out_max, ref_max, atol=1e-6, rtol=1e-6), "max mismatch"

    # avg_pool path (MXU matmul): 0/1 coverage matrix + exact f32 post-scale;
    # tolerance allows for multi-pass bf16 MXU summation-order differences
    # (~1e-7 relative), far below real window-assignment bugs (~0.1+).
    out_avg = jax.block_until_ready(spp_pallas(x, level_num, 'avg_pool'))
    ref_avg = spp_reference(x, level_num, 'avg_pool')
    assert out_avg.shape == (2, expected_cols), out_avg.shape
    assert jnp.allclose(out_avg, ref_avg, atol=1e-3, rtol=1e-3), "avg mismatch"

    print("KERNEL_OK")
</pallas_src>

<mosaic_0001>
module attributes {stable_mosaic.version = 11 : i64} {
  func.func @_spp_max_kernel(%arg0: i32, %arg1: memref<8x16x16xf32, #tpu.memory_space<vmem>>, %arg2: memref<8x14xf32, #tpu.memory_space<vmem>>) attributes {dimension_semantics = [#tpu.dimension_semantics<parallel>], iteration_bounds = array<i64: 1>, scalar_prefetch = 0 : i64, scratch_operands = 0 : i64, tpu.core_type = #tpu.core_type<tc>, window_params = [{transform_indices = @transform_0, window_bounds = array<i64: 8, 16, 16>}, {transform_indices = @transform_1, window_bounds = array<i64: 8, 14>}]} {
    %c0 = arith.constant 0 : index
    %c0_0 = arith.constant 0 : index
    %c0_1 = arith.constant 0 : index
    %0 = vector.load %arg1[%c0, %c0_0, %c0_1] : memref<8x16x16xf32, #tpu.memory_space<vmem>>, vector<8x16x16xf32>
    %cst = arith.constant dense<0xFF800000> : vector<8x16xf32>
    %1 = vector.multi_reduction <maximumf>, %0, %cst [2] : vector<8x16x16xf32> to vector<8x16xf32>
    %2 = vector.shape_cast %1 : vector<8x16xf32> to vector<8x16x1xf32>
    %cst_2 = arith.constant dense<0xFF800000> : vector<8x1xf32>
    %3 = vector.multi_reduction <maximumf>, %2, %cst_2 [1] : vector<8x16x1xf32> to vector<8x1xf32>
    %4 = vector.shape_cast %3 : vector<8x1xf32> to vector<8x1x1xf32>
    %5 = vector.shape_cast %4 : vector<8x1x1xf32> to vector<8x1xf32>
    %6 = vector.extract_strided_slice %0 {offsets = [0, 0, 0], sizes = [8, 16, 8], strides = [1, 1, 1]} : vector<8x16x16xf32> to vector<8x16x8xf32>
    %cst_3 = arith.constant dense<0xFF800000> : vector<8x16xf32>
    %7 = vector.multi_reduction <maximumf>, %6, %cst_3 [2] : vector<8x16x8xf32> to vector<8x16xf32>
    %8 = vector.shape_cast %7 : vector<8x16xf32> to vector<8x16x1xf32>
    %9 = vector.extract_strided_slice %0 {offsets = [0, 0, 8], sizes = [8, 16, 8], strides = [1, 1, 1]} : vector<8x16x16xf32> to vector<8x16x8xf32>
    %cst_4 = arith.constant dense<0xFF800000> : vector<8x16xf32>
    %10 = vector.multi_reduction <maximumf>, %9, %cst_4 [2] : vector<8x16x8xf32> to vector<8x16xf32>
    %11 = vector.shape_cast %10 : vector<8x16xf32> to vector<8x16x1xf32>
    %12 = tpu.concatenate %8, %11 in 2 : vector<8x16x1xf32>, vector<8x16x1xf32> -> vector<8x16x2xf32>
    %13 = vector.extract_strided_slice %12 {offsets = [0, 0, 0], sizes = [8, 8, 2], strides = [1, 1, 1]} : vector<8x16x2xf32> to vector<8x8x2xf32>
    %cst_5 = arith.constant dense<0xFF800000> : vector<8x2xf32>
    %14 = vector.multi_reduction <maximumf>, %13, %cst_5 [1] : vector<8x8x2xf32> to vector<8x2xf32>
    %15 = vector.shape_cast %14 : vector<8x2xf32> to vector<8x1x2xf32>
    %16 = vector.extract_strided_slice %12 {offsets = [0, 8, 0], sizes = [8, 8, 2], strides = [1, 1, 1]} : vector<8x16x2xf32> to vector<8x8x2xf32>
    %cst_6 = arith.constant dense<0xFF800000> : vector<8x2xf32>
    %17 = vector.multi_reduction <maximumf>, %16, %cst_6 [1] : vector<8x8x2xf32> to vector<8x2xf32>
    %18 = vector.shape_cast %17 : vector<8x2xf32> to vector<8x1x2xf32>
    %19 = tpu.concatenate %15, %18 in 1 : vector<8x1x2xf32>, vector<8x1x2xf32> -> vector<8x2x2xf32>
    %20 = vector.shape_cast %19 : vector<8x2x2xf32> to vector<8x4xf32>
    %21 = vector.extract_strided_slice %0 {offsets = [0, 0, 0], sizes = [8, 16, 5], strides = [1, 1, 1]} : vector<8x16x16xf32> to vector<8x16x5xf32>
    %cst_7 = arith.constant dense<0xFF800000> : vector<8x16xf32>
    %22 = vector.multi_reduction <maximumf>, %21, %cst_7 [2] : vector<8x16x5xf32> to vector<8x16xf32>
    %23 = vector.shape_cast %22 : vector<8x16xf32> to vector<8x16x1xf32>
    %24 = vector.extract_strided_slice %0 {offsets = [0, 0, 5], sizes = [8, 16, 6], strides = [1, 1, 1]} : vector<8x16x16xf32> to vector<8x16x6xf32>
    %cst_8 = arith.constant dense<0xFF800000> : vector<8x16xf32>
    %25 = vector.multi_reduction <maximumf>, %24, %cst_8 [2] : vector<8x16x6xf32> to vector<8x16xf32>
    %26 = vector.shape_cast %25 : vector<8x16xf32> to vector<8x16x1xf32>
    %27 = vector.extract_strided_slice %0 {offsets = [0, 0, 11], sizes = [8, 16, 5], strides = [1, 1, 1]} : vector<8x16x16xf32> to vector<8x16x5xf32>
    %cst_9 = arith.constant dense<0xFF800000> : vector<8x16xf32>
    %28 = vector.multi_reduction <maximumf>, %27, %cst_9 [2] : vector<8x16x5xf32> to vector<8x16xf32>
    %29 = vector.shape_cast %28 : vector<8x16xf32> to vector<8x16x1xf32>
    %30 = tpu.concatenate %23, %26, %29 in 2 : vector<8x16x1xf32>, vector<8x16x1xf32>, vector<8x16x1xf32> -> vector<8x16x3xf32>
    %31 = vector.extract_strided_slice %30 {offsets = [0, 0, 0], sizes = [8, 5, 3], strides = [1, 1, 1]} : vector<8x16x3xf32> to vector<8x5x3xf32>
    %cst_10 = arith.constant dense<0xFF800000> : vector<8x3xf32>
    %32 = vector.multi_reduction <maximumf>, %31, %cst_10 [1] : vector<8x5x3xf32> to vector<8x3xf32>
    %33 = vector.shape_cast %32 : vector<8x3xf32> to vector<8x1x3xf32>
    %34 = vector.extract_strided_slice %30 {offsets = [0, 5, 0], sizes = [8, 6, 3], strides = [1, 1, 1]} : vector<8x16x3xf32> to vector<8x6x3xf32>
    %cst_11 = arith.constant dense<0xFF800000> : vector<8x3xf32>
    %35 = vector.multi_reduction <maximumf>, %34, %cst_11 [1] : vector<8x6x3xf32> to vector<8x3xf32>
    %36 = vector.shape_cast %35 : vector<8x3xf32> to vector<8x1x3xf32>
    %37 = vector.extract_strided_slice %30 {offsets = [0, 11, 0], sizes = [8, 5, 3], strides = [1, 1, 1]} : vector<8x16x3xf32> to vector<8x5x3xf32>
    %cst_12 = arith.constant dense<0xFF800000> : vector<8x3xf32>
    %38 = vector.multi_reduction <maximumf>, %37, %cst_12 [1] : vector<8x5x3xf32> to vector<8x3xf32>
    %39 = vector.shape_cast %38 : vector<8x3xf32> to vector<8x1x3xf32>
    %40 = tpu.concatenate %33, %36, %39 in 1 : vector<8x1x3xf32>, vector<8x1x3xf32>, vector<8x1x3xf32> -> vector<8x3x3xf32>
    %41 = vector.shape_cast %40 : vector<8x3x3xf32> to vector<8x9xf32>
    %42 = tpu.concatenate %5, %20, %41 in 1 : vector<8x1xf32>, vector<8x4xf32>, vector<8x9xf32> -> vector<8x14xf32>
    %c0_13 = arith.constant 0 : index
    %c0_14 = arith.constant 0 : index
    %43 = vector.load %arg2[%c0_13, %c0_14] : memref<8x14xf32, #tpu.memory_space<vmem>>, vector<8x14xf32>
    tpu.vector_store %arg2[%c0_13, %c0_14], %42 {strides = array<i32>} : memref<8x14xf32, #tpu.memory_space<vmem>>, vector<8x14xf32>,
    return
  }
  func.func @transform_0(%arg0: i32) -> (i32, i32, i32) {
    %c0_i32 = arith.constant 0 : i32
    %c0_i32_0 = arith.constant 0 : i32
    %c0_i32_1 = arith.constant 0 : i32
    return %arg0, %c0_i32, %c0_i32_0 : i32, i32, i32
  }
  func.func @transform_1(%arg0: i32) -> (i32, i32) {
    %c0_i32 = arith.constant 0 : i32
    %c0_i32_0 = arith.constant 0 : i32
    return %arg0, %c0_i32 : i32, i32
  }
}

</mosaic_0001>

<bundles_post_ra>
// kernel: tpu_custom_call.1
= control target key start
LH: loop header
LB: loop body
LE: loop exit
PB: predicated region body
PF: predicated region fallthrough
CT: control target
= control target key end

     0   :  { %6 = vsyncpa [#allocation3], 0  ;;  %s1584_s0 = inlined_call_operand.hbm [shape: f32[8,16,16], index: 0, kind: input, shape index: {}]   ;;  %s1585_s1 = inlined_call_operand.hbm [shape: f32[8,14], index: 1, kind: output, shape index: {}]  }
   0x1   :  { %7 = vsyncpa [#allocation4], 0  ;;  %s1017_s6 = smov [#allocation2]   ;;  %s969_s10 = scalar_lea.hbm %s1584_s0, 2048 }
   0x2   :  { %s13_s7 = sshll.u32 %s1017_s6, 4  ;;  %p970_p0 = scmp.ne.s32.totalorder %s1584_s0, %s969_s10  ;;  %s14_s7 = int_to_ptr.vmem [resolvable:$true] %s13_s7 }
   0x3   :  { %p973_p1 = scmp.lt.u32.totalorder %s969_s10, %s1584_s0 }
   0x5   :  { %p975_p2 = pnand %p973_p1, %p970_p0 }
   0x7   :  { %978 = shalt.err (!%p975_p2)
}
   0x8   :  { %s979_s15 = scalar_lea.vmem %s14_s7, 2048  ;;  %p984_p4 = scmp.lt.s32.totalorder %s14_s7, %s14_s7 }
   0x9   :  { %p980_p3 = scmp.ne.s32.totalorder %s14_s7, %s979_s15  ;;  %p985_p5 = scmp.lt.s32.totalorder %s979_s15, %s979_s15 }
   0xb   :  { %p986_p6 = por %p985_p5, %p984_p4 }
   0xd   :  { %p987_p7 = pnand %p986_p6, %p980_p3 }
   0xf   :  { %990 = shalt.err (!%p987_p7)
}
  0x10   :  { %s1018_s16 = smov 128   ;;  %s1019_s17 = smov 8  }
  0x11   :  { %19 = dma.hbm_to_vmem [thread:$0]  %s1584_s0, 2048, %s14_s7, [#allocation3], %s1018_s16, %s1018_s16, %s1019_s17  }
  0x12   :  { %1013 = dma.done.wait [#allocation3], 2048  }
  0x13   :  { %1014 = vsyncadd [#allocation3], 4294965248  ;;  %vm39_vm0 = vcmask 130048   ;;  %v1050_v0 = vld [vmem:[#allocation2 + $0x10] sm:$0xff]  ;;  %v1052_v1 = vld [vmem:[#allocation2] sm:$0xff]  ;;  %vm436_vm1 = vcmask 39936  }
  0x14   :  { %v1054_v2 = vld [vmem:[#allocation2 + $0x18] sm:$0xff]  ;;  %v46_v3 = vsel %vm39_vm0, %v1050_v0, -inf  ;;  %v40_v4 = vsel %vm39_vm0, %v1052_v1, -inf  ;;  %v1060_v5 = vld [vmem:[#allocation2 + $0x8] sm:$0xff]  ;;  %v1068_v9 = vld [vmem:[#allocation2 + $0x20] sm:$0xff]  ;;  %v437_v13 = vsel %vm436_vm1, %v1052_v1, -inf }
  0x15   :  { %47 = vmax.xlane.f32.xlu1 %v46_v3  ;;  %41 = vmax.xlane.f32.xlu0 %v40_v4  ;;  %v49_v6 = vsel %vm39_vm0, %v1054_v2, -inf  ;;  %v43_v7 = vsel %vm39_vm0, %v1060_v5, -inf  ;;  %v1066_v8 = vld [vmem:[#allocation2 + $0x28] sm:$0xff]  ;;  %v52_v11 = vsel %vm39_vm0, %v1068_v9, -inf  ;;  %v1074_v12 = vld [vmem:[#allocation2 + $0x30] sm:$0xff]  ;;  %v443_v15 = vsel %vm436_vm1, %v1050_v0, -inf }
  0x16   :  { %v55_v10 = vsel %vm39_vm0, %v1066_v8, -inf  ;;  %v58_v14 = vsel %vm39_vm0, %v1074_v12, -inf  ;;  %v440_v16 = vsel %vm436_vm1, %v1060_v5, -inf  ;;  %v449_v17 = vsel %vm436_vm1, %v1068_v9, -inf  ;;  %v1092_v21 = vld [vmem:[#allocation2 + $0x40] sm:$0xff]  ;;  %v1094_v22 = vld [vmem:[#allocation2 + $0x38] sm:$0xff] }
  0x17   :  { %v446_v18 = vsel %vm436_vm1, %v1054_v2, -inf  ;;  %v455_v19 = vsel %vm436_vm1, %v1074_v12, -inf  ;;  %v452_v20 = vsel %vm436_vm1, %v1066_v8, -inf  ;;  %v461_v23 = vsel %vm436_vm1, %v1092_v21, -inf  ;;  %v1100_v25 = vld [vmem:[#allocation2 + $0x50] sm:$0xff]  ;;  %v1102_v26 = vld [vmem:[#allocation2 + $0x48] sm:$0xff] }
  0x18   :  { %v458_v24 = vsel %vm436_vm1, %v1094_v22, -inf  ;;  %v467_v27 = vsel %vm436_vm1, %v1100_v25, -inf  ;;  %v464_v28 = vsel %vm436_vm1, %v1102_v26, -inf  ;;  %v1108_v29 = vld [vmem:[#allocation2 + $0x60] sm:$0xff]  ;;  %v1110_v30 = vld [vmem:[#allocation2 + $0x58] sm:$0xff]  ;;  %v1116_v33 = vld [vmem:[#allocation2 + $0x70] sm:$0xff] }
  0x19   :  { %50 = vmax.xlane.f32.xlu1 %v49_v6  ;;  %44 = vmax.xlane.f32.xlu0 %v43_v7  ;;  %v473_v31 = vsel %vm436_vm1, %v1108_v29, -inf  ;;  %v470_v32 = vsel %vm436_vm1, %v1110_v30, -inf  ;;  %v1118_v34 = vld [vmem:[#allocation2 + $0x68] sm:$0xff]  ;;  %v479_v35 = vsel %vm436_vm1, %v1116_v33, -inf  ;;  %vm485_vm2 = vcmask 89128   ;;  %v1124_v37 = vld [vmem:[#allocation2 + $0x78] sm:$0xff] }
  0x1a   :  { %v476_v36 = vsel %vm436_vm1, %v1118_v34, -inf  ;;  %v486_v38 = vsel %vm485_vm2, %v1052_v1, -inf  ;;  %v482_v39 = vsel %vm436_vm1, %v1124_v37, -inf  ;;  %v492_v40 = vsel %vm485_vm2, %v1050_v0, -inf  ;;  %s1022_s0 = smov 3   ;;  %s1023_s20 = smov 2  }
  0x1b   :  { %v489_v41 = vsel %vm485_vm2, %v1060_v5, -inf  ;;  %v498_v42 = vsel %vm485_vm2, %v1068_v9, -inf  ;;  %v495_v43 = vsel %vm485_vm2, %v1054_v2, -inf  ;;  %v504_v44 = vsel %vm485_vm2, %v1074_v12, -inf  ;;  %s1024_s21 = smov 6   ;;  %s1025_s22 = smov 1  }
  0x1c   :  { %v501_v45 = vsel %vm485_vm2, %v1066_v8, -inf  ;;  %v510_v46 = vsel %vm485_vm2, %v1092_v21, -inf  ;;  %v507_v47 = vsel %vm485_vm2, %v1094_v22, -inf  ;;  %v516_v48 = vsel %vm485_vm2, %v1100_v25, -inf  ;;  %s1026_s23 = smov 5   ;;  %s1027_s24 = smov [#allocation5]  }
  0x1d   :  { %56 = vmax.xlane.f32.xlu1 %v55_v10  ;;  %53 = vmax.xlane.f32.xlu0 %v52_v11  ;;  %v513_v49 = vsel %vm485_vm2, %v1102_v26, -inf  ;;  %v522_v50 = vsel %vm485_vm2, %v1108_v29, -inf  ;;  %v519_v51 = vsel %vm485_vm2, %v1110_v30, -inf  ;;  %v528_v52 = vsel %vm485_vm2, %v1116_v33, -inf  ;;  %s940_s25 = sshll.u32 %s1027_s24, 4  ;;  %s941_s25 = int_to_ptr.vmem [resolvable:$true] %s940_s25 }
  0x1e   :  { %v525_v53 = vsel %vm485_vm2, %v1118_v34, -inf  ;;  %vm534_vm3 = vcmask 130136   ;;  %v531_v55 = vsel %vm485_vm2, %v1124_v37, -inf  ;;  %vm144_vm4 = vcmask 64512   ;;  %s991_s26 = scalar_lea.vmem %s941_s25, 128  ;;  %p996_p9 = scmp.lt.s32.totalorder %s941_s25, %s941_s25 }
  0x1f   :  { %v535_v54 = vsel %vm534_vm3, %v1052_v1, -inf  ;;  %v541_v56 = vsel %vm534_vm3, %v1050_v0, -inf  ;;  %v538_v57 = vsel %vm534_vm3, %v1060_v5, -inf  ;;  %v547_v58 = vsel %vm534_vm3, %v1068_v9, -inf  ;;  %p992_p8 = scmp.ne.s32.totalorder %s941_s25, %s991_s26  ;;  %p997_p10 = scmp.lt.s32.totalorder %s991_s26, %s991_s26 }
  0x20   :  { %v544_v59 = vsel %vm534_vm3, %v1054_v2, -inf  ;;  %v553_v60 = vsel %vm534_vm3, %v1074_v12, -inf  ;;  %v550_v61 = vsel %vm534_vm3, %v1066_v8, -inf  ;;  %v559_v62 = vsel %vm534_vm3, %v1092_v21, -inf }
  0x21   :  { %438 = vmax.xlane.f32.xlu1 %v437_v13  ;;  %59 = vmax.xlane.f32.xlu0 %v58_v14  ;;  %v556_v63 = vsel %vm534_vm3, %v1094_v22, -inf  ;;  %v565_v3 = vsel %vm534_vm3, %v1100_v25, -inf  ;;  %v562_v4 = vsel %vm534_vm3, %v1102_v26, -inf  ;;  %v571_v6 = vsel %vm534_vm3, %v1108_v29, -inf  ;;  %p998_p11 = por %p997_p10, %p996_p9 }
  0x22   :  { %v568_v7 = vsel %vm534_vm3, %v1110_v30, -inf  ;;  %v577_v10 = vsel %vm534_vm3, %v1116_v33, -inf  ;;  %v574_v11 = vsel %vm534_vm3, %v1118_v34, -inf  ;;  %v145_v13 = vsel %vm144_vm4, %v1052_v1, -inf }
  0x23   :  { %v580_v14 = vsel %vm534_vm3, %v1124_v37, -inf  ;;  %vm193_vm5 = vcmask 130112   ;;  %vm907_vm6 = vcmask 1041409   ;;  %vm909_vm7 = vcmask 1042434   ;;  %p999_p12 = pnand %p998_p11, %p992_p8 }
  0x24   :  { %vm242_vm8 = vcmask 7168   ;;  %vm259_vm9 = vcmask 15360   ;;  %vm615_vm10 = vcmask 20480   ;;  %vm672_vm11 = vcmask 23557  }
  0x25   :  { %444 = vmax.xlane.f32.xlu1 %v443_v15  ;;  %441 = vmax.xlane.f32.xlu0 %v440_v16  ;;  %v151_v15 = vsel %vm144_vm4, %v1050_v0, -inf  ;;  %v148_v16 = vsel %vm144_vm4, %v1060_v5, -inf  ;;  %vm674_vm12 = vcmask 18432   ;;  %vm746_vm13 = vcmask 23555  }
  0x26   :  { %vm372_vm14 = vcmask 1040384   ;;  %vm811_vm15 = vcmask 1041408   ;;  %vm895_vm2 = vcmask 23552   ;;  %vm897_vm3 = vcmask 48128  }
  0x29   :  { %450 = vmax.xlane.f32.xlu1 %v449_v17  ;;  %447 = vmax.xlane.f32.xlu0 %v446_v18  ;;  %v157_v17 = vsel %vm144_vm4, %v1068_v9, -inf  ;;  %v154_v18 = vsel %vm144_vm4, %v1054_v2, -inf }
  0x2d   :  { %456 = vmax.xlane.f32.xlu1 %v455_v19  ;;  %453 = vmax.xlane.f32.xlu0 %v452_v20  ;;  %v163_v19 = vsel %vm144_vm4, %v1074_v12, -inf  ;;  %v160_v20 = vsel %vm144_vm4, %v1066_v8, -inf }
  0x31   :  { %462 = vmax.xlane.f32.xlu1 %v461_v23  ;;  %459 = vmax.xlane.f32.xlu0 %v458_v24  ;;  %v169_v23 = vsel %vm144_vm4, %v1092_v21, -inf  ;;  %v166_v24 = vsel %vm144_vm4, %v1094_v22, -inf }
  0x35   :  { %468 = vmax.xlane.f32.xlu1 %v467_v27  ;;  %465 = vmax.xlane.f32.xlu0 %v464_v28  ;;  %v175_v27 = vsel %vm144_vm4, %v1100_v25, -inf  ;;  %v172_v28 = vsel %vm144_vm4, %v1102_v26, -inf }
  0x39   :  { %474 = vmax.xlane.f32.xlu1 %v473_v31  ;;  %471 = vmax.xlane.f32.xlu0 %v470_v32  ;;  %v181_v31 = vsel %vm144_vm4, %v1108_v29, -inf  ;;  %v178_v32 = vsel %vm144_vm4, %v1110_v30, -inf }
  0x3d   :  { %480 = vmax.xlane.f32.xlu1 %v479_v35  ;;  %477 = vmax.xlane.f32.xlu0 %v476_v36  ;;  %v187_v35 = vsel %vm144_vm4, %v1116_v33, -inf  ;;  %v184_v36 = vsel %vm144_vm4, %v1118_v34, -inf }
  0x41   :  { %487 = vmax.xlane.f32.xlu1 %v486_v38  ;;  %483 = vmax.xlane.f32.xlu0 %v482_v39  ;;  %v194_v38 = vsel %vm193_vm5, %v1052_v1, -inf  ;;  %v190_v39 = vsel %vm144_vm4, %v1124_v37, -inf  ;;  %v206_v1 = vsel %vm193_vm5, %v1068_v9, -inf  ;;  %vm913_vm4 = vcmask 1044484  }
  0x45   :  { %493 = vmax.xlane.f32.xlu1 %v492_v40  ;;  %490 = vmax.xlane.f32.xlu0 %v489_v41 }
  0x49   :  { %499 = vmax.xlane.f32.xlu1 %v498_v42  ;;  %496 = vmax.xlane.f32.xlu0 %v495_v43  ;;  %v200_v42 = vsel %vm193_vm5, %v1050_v0, -inf  ;;  %v197_v43 = vsel %vm193_vm5, %v1060_v5, -inf  ;;  %v212_v5 = vsel %vm193_vm5, %v1074_v12, -inf  ;;  %v215_v12 = vsel %vm193_vm5, %v1094_v22, -inf }
  0x4d   :  { %505 = vmax.xlane.f32.xlu1 %v504_v44  ;;  %502 = vmax.xlane.f32.xlu0 %v501_v45 }
  0x51   :  { %511 = vmax.xlane.f32.xlu1 %v510_v46  ;;  %508 = vmax.xlane.f32.xlu0 %v507_v47  ;;  %v203_v46 = vsel %vm193_vm5, %v1054_v2, -inf }
  0x55   :  { %517 = vmax.xlane.f32.xlu1 %v516_v48  ;;  %514 = vmax.xlane.f32.xlu0 %v513_v49 }
  0x59   :  { %523 = vmax.xlane.f32.xlu1 %v522_v50  ;;  %520 = vmax.xlane.f32.xlu0 %v519_v51 }
  0x5d   :  { %529 = vmax.xlane.f32.xlu1 %v528_v52  ;;  %526 = vmax.xlane.f32.xlu0 %v525_v53  ;;  %v209_v52 = vsel %vm193_vm5, %v1066_v8, -inf }
  0x61   :  { %536 = vmax.xlane.f32.xlu1 %v535_v54  ;;  %532 = vmax.xlane.f32.xlu0 %v531_v55 }
  0x65   :  { %542 = vmax.xlane.f32.xlu1 %v541_v56  ;;  %539 = vmax.xlane.f32.xlu0 %v538_v57 }
  0x69   :  { %548 = vmax.xlane.f32.xlu1 %v547_v58  ;;  %545 = vmax.xlane.f32.xlu0 %v544_v59  ;;  %v218_v59 = vsel %vm193_vm5, %v1092_v21, -inf }
  0x6d   :  { %554 = vmax.xlane.f32.xlu1 %v553_v60  ;;  %551 = vmax.xlane.f32.xlu0 %v550_v61 }
  0x71   :  { %560 = vmax.xlane.f32.xlu1 %v559_v62  ;;  %557 = vmax.xlane.f32.xlu0 %v556_v63 }
  0x75   :  { %566 = vmax.xlane.f32.xlu1 %v565_v3  ;;  %563 = vmax.xlane.f32.xlu0 %v562_v4 }
  0x79   :  { %572 = vmax.xlane.f32.xlu1 %v571_v6  ;;  %569 = vmax.xlane.f32.xlu0 %v568_v7  ;;  %v224_v7 = vsel %vm193_vm5, %v1100_v25, -inf }
  0x7d   :  { %578 = vmax.xlane.f32.xlu1 %v577_v10  ;;  %575 = vmax.xlane.f32.xlu0 %v574_v11  ;;  %v221_v10 = vsel %vm193_vm5, %v1102_v26, -inf }
  0x81   :  { %146 = vmax.xlane.f32.xlu1 %v145_v13  ;;  %581 = vmax.xlane.f32.xlu0 %v580_v14 }
  0x85   :  { %152 = vmax.xlane.f32.xlu1 %v151_v15  ;;  %149 = vmax.xlane.f32.xlu0 %v148_v16  ;;  %v230_v16 = vsel %vm193_vm5, %v1108_v29, -inf }
  0x89   :  { %158 = vmax.xlane.f32.xlu1 %v157_v17  ;;  %155 = vmax.xlane.f32.xlu0 %v154_v18  ;;  %v227_v17 = vsel %vm193_vm5, %v1110_v30, -inf  ;;  %v239_v30 = vsel %vm193_vm5, %v1124_v37, -inf }
  0x8d   :  { %164 = vmax.xlane.f32.xlu1 %v163_v19  ;;  %161 = vmax.xlane.f32.xlu0 %v160_v20 }
  0x91   :  { %170 = vmax.xlane.f32.xlu1 %v169_v23  ;;  %167 = vmax.xlane.f32.xlu0 %v166_v24  ;;  %v236_v23 = vsel %vm193_vm5, %v1116_v33, -inf  ;;  %v233_v24 = vsel %vm193_vm5, %v1118_v34, -inf  ;;  %vm915_vm5 = vcmask 1045509  }
  0x95   :  { %176 = vmax.xlane.f32.xlu1 %v175_v27  ;;  %173 = vmax.xlane.f32.xlu0 %v172_v28 }
  0x99   :  { %182 = vmax.xlane.f32.xlu1 %v181_v31  ;;  %179 = vmax.xlane.f32.xlu0 %v178_v32 }
  0x9d   :  { %188 = vmax.xlane.f32.xlu1 %v187_v35  ;;  %185 = vmax.xlane.f32.xlu0 %v184_v36 }
  0xa1   :  { %195 = vmax.xlane.f32.xlu1 %v194_v38  ;;  %191 = vmax.xlane.f32.xlu0 %v190_v39 }
  0xa2   :  { %v48_v40 = vpop.xlane.xlu1 %47  ;;  %v42_v41 = vpop.xlane.xlu0 %41 }
  0xa5   :  { %201 = vmax.xlane.f32.xlu1 %v200_v42  ;;  %198 = vmax.xlane.f32.xlu0 %v197_v43 }
  0xa6   :  { %v51_v44 = vpop.xlane.xlu1 %50  ;;  %v45_v45 = vpop.xlane.xlu0 %44 }
  0xa7   :  { %v95_v47 = vmax.f32 %v48_v40, %v51_v44  ;;  %v88_v48 = vmax.f32 %v42_v41, %v45_v45 }
  0xa9   :  { %v96_v49 = vrot.slane %v95_v47, 4  ;;  %v89_v50 = vrot.slane %v88_v48, 4  ;;  %207 = vmax.xlane.f32.xlu1 %v206_v1  ;;  %204 = vmax.xlane.f32.xlu0 %v203_v46 }
  0xaa   :  { %v57_v0 = vpop.xlane.xlu1 %56  ;;  %v54_v51 = vpop.xlane.xlu0 %53 }
  0xab   :  { %v97_v53 = vmax.f32 %v95_v47, %v96_v49  ;;  %v90_v54 = vmax.f32 %v88_v48, %v89_v50  ;;  %v102_v9 = vmax.f32 %v54_v51, %v57_v0 }
  0xad   :  { %v98_v55 = vrot.slane %v97_v53, 2  ;;  %v91_v56 = vrot.slane %v90_v54, 2  ;;  %v103_v2 = vrot.slane %v102_v9, 4  ;;  %213 = vmax.xlane.f32.xlu1 %v212_v5  ;;  %210 = vmax.xlane.f32.xlu0 %v209_v52 }
  0xae   :  { %v439_v57 = vpop.xlane.xlu1 %438  ;;  %v1238_v58 = vpop.xlane.xlu0 %59 }
  0xaf   :  { %v99_v60 = vmax.f32 %v97_v53, %v98_v55  ;;  %v92_v61 = vmax.f32 %v90_v54, %v91_v56  ;;  %v104_v8 = vmax.f32 %v102_v9, %v103_v2  ;;  %v1020_v9 = vmov 1983009808  }
  0xb0   :  { %v383_v55 = vunpack.c.l.s4 %v1020_v9  ;;  %v385_v56 = vlaneseq }
  0xb1   :  { %v100_v62 = vrot.slane %v99_v60, 1  ;;  %v93_v63 = vrot.slane %v92_v61, 1  ;;  %v105_v3 = vrot.slane %v104_v8, 2  ;;  %219 = vmax.xlane.f32.xlu1 %v218_v59  ;;  %216 = vmax.xlane.f32.xlu0 %v215_v12 }
  0xb2   :  { %v445_v4 = vpop.xlane.xlu1 %444  ;;  %v442_v6 = vpop.xlane.xlu0 %441  ;;  %v384_v59 = vunpack.c.0.s8 %v383_v55  ;;  %v1286_v12 = vshrl.u32 %v385_v56, 7 }
  0xb3   :  { %v106_v21 = vmax.f32 %v104_v8, %v105_v3  ;;  %v101_v11 = vmax.f32 %v99_v60, %v100_v62  ;;  %v94_v13 = vmax.f32 %v92_v61, %v93_v63 }
  0xb4   :  { %v1291_v3 = vsub.s32 %v384_v59, %v1286_v12 }
  0xb5   :  { %v107_v22 = vrot.slane %v106_v21, 1  ;;  %225 = vmax.xlane.f32.xlu1 %v224_v7  ;;  %222 = vmax.xlane.f32.xlu0 %v221_v10  ;;  %v908_v18 = vsel %vm907_vm6, %v101_v11, %v94_v13  ;;  %vm917_vm6 = vcmask 1046534  }
  0xb6   :  { %v451_v14 = vpop.xlane.xlu1 %450  ;;  %v448_v15 = vpop.xlane.xlu0 %447 }
  0xb7   :  { %v108_v25 = vmax.f32 %v106_v21, %v107_v22 }
  0xb9   :  { %v1252_v19 = vsel %vm909_vm7, %v108_v25, %v908_v18  ;;  %231 = vmax.xlane.f32.xlu1 %v230_v16  ;;  %228 = vmax.xlane.f32.xlu0 %v227_v17  ;;  %vm919_vm7 = vcmask 1047559  }
  0xba   :  { %v457_v26 = vpop.xlane.xlu1 %456  ;;  %v454_v20 = vpop.xlane.xlu0 %453 }
  0xbd   :  { %237 = vmax.xlane.f32.xlu1 %v236_v23  ;;  %234 = vmax.xlane.f32.xlu0 %v233_v24 }
  0xbe   :  { %v1258_v29 = vpop.xlane.xlu1 %462  ;;  %v1260_v27 = vpop.xlane.xlu0 %459 }
  0xc1   :  { %240 = vmax.xlane.f32.xlu0 %v239_v30 }
  0xc2   :  { %v469_v28 = vpop.xlane.xlu1 %468  ;;  %v466_v31 = vpop.xlane.xlu0 %465 }
  0xc6   :  { %v1264_v32 = vpop.xlane.xlu1 %474  ;;  %v1266_v35 = vpop.xlane.xlu0 %471 }
  0xca   :  { %v1268_v33 = vpop.xlane.xlu1 %480  ;;  %v1270_v36 = vpop.xlane.xlu0 %477 }
  0xce   :  { %v488_v34 = vpop.xlane.xlu1 %487  ;;  %v1272_v38 = vpop.xlane.xlu0 %483 }
  0xcf   :  { %v583_v39 = vsel %vm242_vm8, %v439_v57, %v488_v34 }
  0xd2   :  { %v494_v40 = vpop.xlane.xlu1 %493  ;;  %v491_v41 = vpop.xlane.xlu0 %490 }
  0xd3   :  { %v585_v37 = vsel %vm242_vm8, %v445_v4, %v494_v40  ;;  %v584_v42 = vsel %vm242_vm8, %v442_v6, %v491_v41 }
  0xd6   :  { %v500_v43 = vpop.xlane.xlu1 %499  ;;  %v497_v44 = vpop.xlane.xlu0 %496 }
  0xd7   :  { %v587_v45 = vsel %vm242_vm8, %v451_v14, %v500_v43  ;;  %v586_v1 = vsel %vm242_vm8, %v448_v15, %v497_v44 }
  0xda   :  { %v506_v46 = vpop.xlane.xlu1 %505  ;;  %v503_v47 = vpop.xlane.xlu0 %502 }
  0xdb   :  { %v1280_v48 = vsel %vm242_vm8, %v454_v20, %v503_v47  ;;  %v589_v4 = vsel %vm242_vm8, %v457_v26, %v506_v46 }
  0xde   :  { %v512_v49 = vpop.xlane.xlu1 %511  ;;  %v509_v50 = vpop.xlane.xlu0 %508 }
  0xdf   :  { %v591_v25 = vsel %vm242_vm8, %v1258_v29, %v512_v49  ;;  %v1304_v18 = vsel %vm242_vm8, %v1260_v27, %v509_v50 }
  0xe2   :  { %v518_v0 = vpop.xlane.xlu1 %517  ;;  %v515_v51 = vpop.xlane.xlu0 %514 }
  0xe3   :  { %v1307_v26 = vsel %vm242_vm8, %v469_v28, %v518_v0  ;;  %v1310_v20 = vsel %vm242_vm8, %v466_v31, %v515_v51 }
  0xe6   :  { %v524_v5 = vpop.xlane.xlu1 %523  ;;  %v521_v52 = vpop.xlane.xlu0 %520 }
  0xe7   :  { %v1314_v41 = vsel %vm242_vm8, %v1264_v32, %v524_v5  ;;  %v1318_v29 = vsel %vm242_vm8, %v1266_v35, %v521_v52 }
  0xea   :  { %v530_v53 = vpop.xlane.xlu1 %529  ;;  %v1282_v54 = vpop.xlane.xlu0 %526 }
  0xeb   :  { %v1324_v31 = vsel %vm242_vm8, %v1268_v33, %v530_v53  ;;  %v1334_v53 = vsel %vm242_vm8, %v1270_v36, %v1282_v54 }
  0xee   :  { %v537_v2 = vpop.xlane.xlu1 %536  ;;  %v1284_v57 = vpop.xlane.xlu0 %532 }
  0xef   :  { %v599_v60 = vsel %vm259_vm9, %v583_v39, %v537_v2 }
  0xf0   :  { %v616_v61 = vsel %vm615_vm10, %v599_v60, -inf  ;;  %v673_v21 = vsel %vm672_vm11, %v599_v60, -inf }
  0xf1   :  { %v617_v8 = vrot.slane %v616_v61, 4 }
  0xf2   :  { %v543_v62 = vpop.xlane.xlu1 %542  ;;  %v540_v63 = vpop.xlane.xlu0 %539 }
  0xf3   :  { %v618_v6 = vmax.f32 %v616_v61, %v617_v8  ;;  %v601_v7 = vsel %vm259_vm9, %v585_v37, %v543_v62  ;;  %v600_v10 = vsel %vm259_vm9, %v584_v42, %v540_v63 }
  0xf4   :  { %v623_v11 = vsel %vm615_vm10, %v601_v7, -inf  ;;  %v675_v13 = vsel %vm674_vm12, %v600_v10, -inf  ;;  %v747_v22 = vsel %vm746_vm13, %v600_v10, -inf  ;;  %v683_v32 = vsel %vm672_vm11, %v601_v7, -inf }
  0xf5   :  { %v619_v14 = vrot.slane %v618_v6, 2  ;;  %v624_v15 = vrot.slane %v623_v11, 4  ;;  %v676_v16 = vmax.f32 %v673_v21, %v675_v13  ;;  %v748_v17 = vrot.slane %v747_v22, 4 }
  0xf6   :  { %v549_v23 = vpop.xlane.xlu1 %548  ;;  %v546_v24 = vpop.xlane.xlu0 %545 }
  0xf7   :  { %v620_v30 = vmax.f32 %v618_v6, %v619_v14  ;;  %v625_v34 = vmax.f32 %v623_v11, %v624_v15  ;;  %v677_v39 = vrot.slane %v676_v16, 4  ;;  %v749_v40 = vmax.f32 %v747_v22, %v748_v17 }
  0xf8   :  { %v603_v27 = vsel %vm259_vm9, %v587_v45, %v549_v23  ;;  %v602_v28 = vsel %vm259_vm9, %v586_v1, %v546_v24 }
  0xf9   :  { %v626_v37 = vrot.slane %v625_v34, 2  ;;  %v678_v42 = vmax.f32 %v676_v16, %v677_v39  ;;  %v750_v43 = vrot.slane %v749_v40, 2  ;;  %v630_v44 = vsel %vm615_vm10, %v603_v27, -inf }
  0xfa   :  { %v684_v35 = vsel %vm674_vm12, %v602_v28, -inf  ;;  %v754_v46 = vsel %vm746_vm13, %v602_v28, -inf  ;;  %v555_v47 = vpop.xlane.xlu1 %554  ;;  %v552_v45 = vpop.xlane.xlu0 %551  ;;  %v621_v49 = vrot.slane %v620_v30, 1  ;;  %v631_v33 = vrot.slane %v630_v44, 4 }
  0xfb   :  { %v627_v1 = vmax.f32 %v625_v34, %v626_v37  ;;  %v679_v50 = vrot.slane %v678_v42, 2  ;;  %v751_v0 = vmax.f32 %v749_v40, %v750_v43  ;;  %v685_v51 = vmax.f32 %v683_v32, %v684_v35 }
  0xfc   :  { %v755_v5 = vrot.slane %v754_v46, 4  ;;  %v605_v52 = vsel %vm259_vm9, %v589_v4, %v555_v47  ;;  %v632_v2 = vmax.f32 %v630_v44, %v631_v33  ;;  %v622_v63 = vmax.f32 %v620_v30, %v621_v49 }
  0xfd   :  { %v680_v9 = vmax.f32 %v678_v42, %v679_v50  ;;  %v752_v55 = vrot.slane %v751_v0, 1  ;;  %v637_v56 = vsel %vm615_vm10, %v605_v52, -inf  ;;  %v686_v59 = vrot.slane %v685_v51, 4 }
  0xfe   :  { %v756_v60 = vmax.f32 %v754_v46, %v755_v5  ;;  %v638_v61 = vrot.slane %v637_v56, 4  ;;  %v561_v8 = vpop.xlane.xlu1 %560  ;;  %v558_v62 = vpop.xlane.xlu0 %557  ;;  %v1340_v4 = vsel %vm242_vm8, %v1272_v38, %v1284_v57  ;;  %v628_v6 = vrot.slane %v627_v1, 1 }
  0xff   :  { %v681_v7 = vrot.slane %v680_v9, 1  ;;  %v633_v36 = vrot.slane %v632_v2, 2  ;;  %v687_v54 = vmax.f32 %v685_v51, %v686_v59  ;;  %v753_v13 = vmax.f32 %v751_v0, %v752_v55 }
 0x100   :  { %v757_v10 = vrot.slane %v756_v60, 2  ;;  %v639_v21 = vmax.f32 %v637_v56, %v638_v61  ;;  %v604_v22 = vsel %vm259_vm9, %v1280_v48, %v552_v45  ;;  %v607_v14 = vsel %vm259_vm9, %v591_v25, %v561_v8 }
 0x101   :  { %v682_v11 = vmax.f32 %v680_v9, %v681_v7  ;;  %v634_v15 = vmax.f32 %v632_v2, %v633_v36  ;;  %v688_v16 = vrot.slane %v687_v54, 2  ;;  %v693_v30 = vsel %vm674_vm12, %v604_v22, -inf }
 0x102   :  { %v758_v17 = vmax.f32 %v756_v60, %v757_v10  ;;  %v640_v23 = vrot.slane %v639_v21, 2  ;;  %v567_v24 = vpop.xlane.xlu1 %566  ;;  %v564_v38 = vpop.xlane.xlu0 %563  ;;  %v761_v34 = vsel %vm746_vm13, %v604_v22, -inf  ;;  %v644_v39 = vsel %vm615_vm10, %v607_v14, -inf }
 0x103   :  { %v803_v57 = vsel %vm372_vm14, %v622_v63, %v682_v11  ;;  %v692_v48 = vsel %vm672_vm11, %v603_v27, -inf  ;;  %v689_v25 = vmax.f32 %v687_v54, %v688_v16  ;;  %v606_v28 = vsel %vm259_vm9, %v1304_v18, %v558_v62 }
 0x104   :  { %v1350_v40 = vsel %vm811_vm15, %v803_v57, %v753_v13  ;;  %v759_v37 = vrot.slane %v758_v17, 1  ;;  %v694_v42 = vmax.f32 %v692_v48, %v693_v30  ;;  %v762_v43 = vrot.slane %v761_v34, 4 }
 0x105   :  { %v645_v32 = vrot.slane %v644_v39, 4  ;;  %v629_v44 = vmax.f32 %v627_v1, %v628_v6  ;;  %v635_v35 = vrot.slane %v634_v15, 1  ;;  %v690_v46 = vrot.slane %v689_v25, 1 }
 0x106   :  { %v701_v47 = vsel %vm672_vm11, %v605_v52, -inf  ;;  %v573_v45 = vpop.xlane.xlu1 %572  ;;  %v1356_v49 = vpop.xlane.xlu0 %569  ;;  %v641_v50 = vmax.f32 %v639_v21, %v640_v23  ;;  %v695_v0 = vrot.slane %v694_v42, 4  ;;  %v763_v33 = vmax.f32 %v761_v34, %v762_v43 }
 0x107   :  { %v646_v27 = vmax.f32 %v644_v39, %v645_v32  ;;  %v691_v51 = vmax.f32 %v689_v25, %v690_v46  ;;  %v702_v5 = vsel %vm674_vm12, %v606_v28, -inf  ;;  %v768_v18 = vsel %vm746_vm13, %v606_v28, -inf }
 0x108   :  { %v609_v9 = vsel %vm259_vm9, %v1307_v26, %v567_v24  ;;  %v760_v1 = vmax.f32 %v758_v17, %v759_v37  ;;  %v696_v55 = vmax.f32 %v694_v42, %v695_v0  ;;  %v764_v56 = vrot.slane %v763_v33, 2 }
 0x109   :  { %v647_v2 = vrot.slane %v646_v27, 2  ;;  %v804_v52 = vsel %vm372_vm14, %v629_v44, %v691_v51  ;;  %v703_v59 = vmax.f32 %v701_v47, %v702_v5  ;;  %v769_v60 = vrot.slane %v768_v18, 4 }
 0x10a   :  { %v651_v61 = vsel %vm615_vm10, %v609_v9, -inf  ;;  %v579_v8 = vpop.xlane.xlu1 %578  ;;  %v1364_v62 = vpop.xlane.xlu0 %575  ;;  %v1367_v63 = vsel %vm811_vm15, %v804_v52, %v760_v1  ;;  %v697_v6 = vrot.slane %v696_v55, 2  ;;  %v765_v7 = vmax.f32 %v763_v33, %v764_v56 }
 0x10b   :  { %v648_v36 = vmax.f32 %v646_v27, %v647_v2  ;;  %v636_v26 = vmax.f32 %v634_v15, %v635_v35  ;;  %v704_v54 = vrot.slane %v703_v59, 4  ;;  %v770_v10 = vmax.f32 %v768_v18, %v769_v60 }
 0x10c   :  { %v652_v21 = vrot.slane %v651_v61, 4  ;;  %v698_v11 = vmax.f32 %v696_v55, %v697_v6  ;;  %v766_v13 = vrot.slane %v765_v7, 1  ;;  %v710_v22 = vsel %vm672_vm11, %v607_v14, -inf }
 0x10d   :  { %v608_v16 = vsel %vm259_vm9, %v1310_v20, %v564_v38  ;;  %v705_v17 = vmax.f32 %v703_v59, %v704_v54  ;;  %v771_v23 = vrot.slane %v770_v10, 2  ;;  %v642_v15 = vrot.slane %v641_v50, 1 }
 0x10e   :  { %v653_v24 = vmax.f32 %v651_v61, %v652_v21  ;;  %v711_v57 = vsel %vm674_vm12, %v608_v16, -inf  ;;  %v1373_v30 = vpop.xlane.xlu1 %146  ;;  %v1375_v34 = vpop.xlane.xlu0 %581  ;;  %v699_v39 = vrot.slane %v698_v11, 1  ;;  %v649_v48 = vrot.slane %v648_v36, 1 }
 0x10f   :  { %v712_v25 = vmax.f32 %v710_v22, %v711_v57  ;;  %v767_v28 = vmax.f32 %v765_v7, %v766_v13  ;;  %v706_v37 = vrot.slane %v705_v17, 2  ;;  %v772_v42 = vmax.f32 %v770_v10, %v771_v23 }
 0x110   :  { %v775_v14 = vsel %vm746_vm13, %v608_v16, -inf  ;;  %v700_v43 = vmax.f32 %v698_v11, %v699_v39  ;;  %v611_v32 = vsel %vm259_vm9, %v1314_v41, %v573_v45  ;;  %v654_v46 = vrot.slane %v653_v24, 2 }
 0x111   :  { %v713_v20 = vrot.slane %v712_v25, 4  ;;  %v776_v38 = vrot.slane %v775_v14, 4  ;;  %v707_v44 = vmax.f32 %v705_v17, %v706_v37  ;;  %v773_v35 = vrot.slane %v772_v42, 1 }
 0x112   :  { %v658_v47 = vsel %vm615_vm10, %v611_v32, -inf  ;;  %v1381_v0 = vpop.xlane.xlu1 %152  ;;  %v1383_v33 = vpop.xlane.xlu0 %149  ;;  %v805_v27 = vsel %vm372_vm14, %v636_v26, %v700_v43  ;;  %v643_v1 = vmax.f32 %v641_v50, %v642_v15  ;;  %v719_v41 = vsel %vm672_vm11, %v609_v9, -inf }
 0x113   :  { %v714_v51 = vmax.f32 %v712_v25, %v713_v20  ;;  %v777_v5 = vmax.f32 %v775_v14, %v776_v38  ;;  %v659_v18 = vrot.slane %v658_v47, 4  ;;  %v1387_v55 = vsel %vm811_vm15, %v805_v27, %v767_v28 }
 0x114   :  { %v708_v56 = vrot.slane %v707_v44, 1  ;;  %v650_v45 = vmax.f32 %v648_v36, %v649_v48  ;;  %v655_v61 = vmax.f32 %v653_v24, %v654_v46  ;;  %v610_v6 = vsel %vm259_vm9, %v1318_v29, %v1356_v49 }
 0x115   :  { %v715_v2 = vrot.slane %v714_v51, 2  ;;  %v778_v52 = vrot.slane %v777_v5, 2  ;;  %v660_v59 = vmax.f32 %v658_v47, %v659_v18  ;;  %v613_v7 = vsel %vm259_vm9, %v1324_v31, %v579_v8 }
 0x116   :  { %v709_v60 = vmax.f32 %v707_v44, %v708_v56  ;;  %v1395_v50 = vpop.xlane.xlu1 %158  ;;  %v1397_v26 = vpop.xlane.xlu0 %155  ;;  %v774_v54 = vmax.f32 %v772_v42, %v773_v35  ;;  %v720_v36 = vsel %vm674_vm12, %v610_v6, -inf  ;;  %v782_v13 = vsel %vm746_vm13, %v610_v6, -inf }
 0x117   :  { %v716_v10 = vmax.f32 %v714_v51, %v715_v2  ;;  %v779_v9 = vmax.f32 %v777_v5, %v778_v52  ;;  %v721_v11 = vmax.f32 %v719_v41, %v720_v36  ;;  %v665_v22 = vsel %vm615_vm10, %v613_v7, -inf }
 0x118   :  { %v806_v21 = vsel %vm372_vm14, %v643_v1, %v709_v60  ;;  %v661_v8 = vrot.slane %v660_v59, 2  ;;  %v656_v16 = vrot.slane %v655_v61, 1  ;;  %v783_v23 = vrot.slane %v782_v13, 4 }
 0x119   :  { %v1404_v29 = vsel %vm811_vm15, %v806_v21, %v774_v54  ;;  %v717_v31 = vrot.slane %v716_v10, 1  ;;  %v780_v49 = vrot.slane %v779_v9, 1  ;;  %v722_v17 = vrot.slane %v721_v11, 4 }
 0x11a   :  { %v666_v24 = vrot.slane %v665_v22, 4  ;;  %v1406_v57 = vpop.xlane.xlu1 %164  ;;  %v1408_v15 = vpop.xlane.xlu0 %161  ;;  %v728_v25 = vsel %vm672_vm11, %v611_v32, -inf  ;;  %v612_v28 = vsel %vm259_vm9, %v1334_v53, %v1364_v62  ;;  %v784_v42 = vmax.f32 %v782_v13, %v783_v23 }
 0x11b   :  { %v718_v39 = vmax.f32 %v716_v10, %v717_v31  ;;  %v781_v48 = vmax.f32 %v779_v9, %v780_v49  ;;  %v723_v37 = vmax.f32 %v721_v11, %v722_v17  ;;  %v729_v43 = vsel %vm674_vm12, %v612_v28, -inf }
 0x11c   :  { %v667_v14 = vmax.f32 %v665_v22, %v666_v24  ;;  %v662_v38 = vmax.f32 %v660_v59, %v661_v8  ;;  %v730_v44 = vmax.f32 %v728_v25, %v729_v43  ;;  %v789_v35 = vsel %vm746_vm13, %v612_v28, -inf }
 0x11d   :  { %v807_v20 = vsel %vm372_vm14, %v650_v45, %v718_v39  ;;  %v724_v47 = vrot.slane %v723_v37, 2  ;;  %v785_v32 = vrot.slane %v784_v42, 2  ;;  %v737_v27 = vsel %vm672_vm11, %v613_v7, -inf }
 0x11e   :  { %v1418_v46 = vsel %vm811_vm15, %v807_v20, %v781_v48  ;;  %v1421_v51 = vpop.xlane.xlu1 %170  ;;  %v1423_v53 = vpop.xlane.xlu0 %167  ;;  %v731_v62 = vrot.slane %v730_v44, 4  ;;  %v790_v5 = vrot.slane %v789_v35, 4  ;;  %v614_v18 = vsel %vm259_vm9, %v1340_v4, %v1375_v34 }
 0x11f   :  { %v820_v1 = vcombine.low %v1350_v40, %v1387_v55  ;;  %v725_v56 = vmax.f32 %v723_v37, %v724_v47  ;;  %v786_v41 = vmax.f32 %v784_v42, %v785_v32  ;;  %v668_v45 = vrot.slane %v667_v14, 2 }
 0x120   :  { %v738_v2 = vsel %vm674_vm12, %v614_v18, -inf  ;;  %v732_v52 = vmax.f32 %v730_v44, %v731_v62  ;;  %v791_v59 = vmax.f32 %v789_v35, %v790_v5  ;;  %v796_v6 = vsel %vm746_vm13, %v614_v18, -inf }
 0x121   :  { %v739_v60 = vmax.f32 %v737_v27, %v738_v2  ;;  %v657_v7 = vmax.f32 %v655_v61, %v656_v16  ;;  %v726_v54 = vrot.slane %v725_v56, 1  ;;  %v787_v10 = vrot.slane %v786_v41, 1 }
 0x122   :  { %v797_v9 = vrot.slane %v796_v6, 4  ;;  %v1432_v36 = vpop.xlane.xlu1 %176  ;;  %v1434_v4 = vpop.xlane.xlu0 %173  ;;  %v663_v34 = vrot.slane %v662_v38, 1  ;;  %v733_v40 = vrot.slane %v732_v52, 2  ;;  %v792_v55 = vrot.slane %v791_v59, 2 }
 0x123   :  { %v740_v21 = vrot.slane %v739_v60, 4  ;;  %v727_v11 = vmax.f32 %v725_v56, %v726_v54  ;;  %v788_v13 = vmax.f32 %v786_v41, %v787_v10  ;;  %v669_v22 = vmax.f32 %v667_v14, %v668_v45 }
 0x124   :  { %v798_v31 = vmax.f32 %v796_v6, %v797_v9  ;;  %v734_v49 = vmax.f32 %v732_v52, %v733_v40  ;;  %v793_v8 = vmax.f32 %v791_v59, %v792_v55  ;;  %v828_v61 = vcombine.low %v1367_v63, %v1404_v29 }
 0x125   :  { %v741_v17 = vmax.f32 %v739_v60, %v740_v21  ;;  %v808_v16 = vsel %vm372_vm14, %v657_v7, %v727_v11  ;;  %v1021_v14 = vmov 1934713408   ;;  %v827_v20 = vrot.slane %v820_v1, %v1291_v3 }
 0x126   :  { %v799_v23 = vrot.slane %v798_v31, 2  ;;  %v1439_v24 = vpop.xlane.xlu1 %182  ;;  %v1441_v39 = vpop.xlane.xlu0 %179  ;;  %v817_v48 = vsel %vm811_vm15, %v808_v16, %v788_v13  ;;  %v735_v25 = vrot.slane %v734_v49, 1  ;;  %v794_v28 = vrot.slane %v793_v8, 1 }
 0x127   :  { %v742_v37 = vrot.slane %v741_v17, 2  ;;  %v415_v43 = vunpack.c.l.s4 %v1021_v14  ;;  %v835_v44 = vrot.slane %v828_v61, %v1291_v3  ;;  %v664_v63 = vmax.f32 %v662_v38, %v663_v34 }
 0x128   :  { %v800_v42 = vmax.f32 %v798_v31, %v799_v23  ;;  %v670_v29 = vrot.slane %v669_v22, 1  ;;  %v736_v35 = vmax.f32 %v734_v49, %v735_v25  ;;  %v795_v32 = vmax.f32 %v793_v8, %v794_v28 }
 0x129   :  { %v743_v47 = vmax.f32 %v741_v17, %v742_v37  ;;  %v852_v18 = vcombine.low %v827_v20, %v835_v44  ;;  %v853_v56 = vcombine.high %v827_v20, %v835_v44  ;;  %v416_v60 = vunpack.c.0.s8 %v415_v43 }
 0x12a   :  { %v801_v27 = vrot.slane %v800_v42, 1  ;;  %v1446_v62 = vpop.xlane.xlu1 %188  ;;  %v1448_v5 = vpop.xlane.xlu0 %185  ;;  %v809_v41 = vsel %vm372_vm14, %v664_v63, %v736_v35  ;;  %v671_v1 = vmax.f32 %v669_v22, %v670_v29 }
 0x12b   :  { %v744_v45 = vrot.slane %v743_v47, 1  ;;  %v818_v2 = vsel %vm811_vm15, %v809_v41, %v795_v32  ;;  %v1461_v55 = vsub.s32 %v416_v60, %v1286_v12 }
 0x12c   :  { %v836_v38 = vcombine.low %v1418_v46, %v818_v2  ;;  %v802_v59 = vmax.f32 %v800_v42, %v801_v27 }
 0x12d   :  { %v745_v52 = vmax.f32 %v743_v47, %v744_v45  ;;  %v1482_v42 = vrot.slane %v853_v56, %v1461_v55 }
 0x12e   :  { %v196_v6 = vpop.xlane.xlu1 %195  ;;  %v1453_v7 = vpop.xlane.xlu0 %191  ;;  %v843_v46 = vrot.slane %v836_v38, %v1291_v3 }
 0x12f   :  { %v810_v54 = vsel %vm372_vm14, %v671_v1, %v745_v52  ;;  %v243_v10 = vsel %vm242_vm8, %v1373_v30, %v196_v6 }
 0x130   :  { %v819_v9 = vsel %vm811_vm15, %v810_v54, %v802_v59  ;;  %v260_v34 = vsel %vm259_vm9, %v243_v10, -inf }
 0x131   :  { %v844_v40 = vcombine.low %v817_v48, %v819_v9  ;;  %v261_v22 = vrot.slane %v260_v34, 4  ;;  %v1472_v48 = vrot.slane %v852_v18, %v1461_v55 }
 0x132   :  { %v202_v21 = vpop.xlane.xlu1 %201  ;;  %v199_v11 = vpop.xlane.xlu0 %198 }
 0x133   :  { %v851_v13 = vrot.slane %v844_v40, %v1291_v3  ;;  %v245_v31 = vsel %vm242_vm8, %v1381_v0, %v202_v21  ;;  %v244_v30 = vsel %vm242_vm8, %v1383_v33, %v199_v11  ;;  %v262_v28 = vmax.f32 %v260_v34, %v261_v22 }
 0x134   :  { %v267_v49 = vsel %vm259_vm9, %v245_v31, -inf  ;;  %v316_v8 = vsel %vm259_vm9, %v244_v30, -inf }
 0x135   :  { %v868_v17 = vcombine.low %v843_v46, %v851_v13  ;;  %v268_v12 = vrot.slane %v267_v49, 4  ;;  %v869_v23 = vcombine.high %v843_v46, %v851_v13  ;;  %v317_v0 = vrot.slane %v316_v8, 4 }
 0x136   :  { %v208_v61 = vpop.xlane.xlu1 %207  ;;  %v205_v16 = vpop.xlane.xlu0 %204  ;;  %v263_v47 = vrot.slane %v262_v28, 2 }
 0x137   :  { %v1475_v25 = vrot.slane %v868_v17, %v1461_v55  ;;  %v247_v33 = vsel %vm242_vm8, %v1395_v50, %v208_v61  ;;  %v246_v37 = vsel %vm242_vm8, %v1397_v26, %v205_v16  ;;  %v1485_v14 = vrot.slane %v869_v23, %v1461_v55 }
 0x138   :  { %v269_v20 = vmax.f32 %v267_v49, %v268_v12  ;;  %v274_v44 = vsel %vm259_vm9, %v247_v33, -inf  ;;  %v323_v63 = vsel %vm259_vm9, %v246_v37, -inf  ;;  %v318_v32 = vmax.f32 %v316_v8, %v317_v0  ;;  %v960_v37 = vld [vmem:[#allocation2 + $0x40] sm:$0xff] }
 0x139   :  { %v885_v43 = vcombine.high %v1472_v48, %v1475_v25  ;;  %v886_v50 = vcombine.low %v1482_v42, %v1485_v14  ;;  %v884_v26 = vcombine.low %v1472_v48, %v1475_v25  ;;  %v275_v27 = vrot.slane %v274_v44, 4 }
 0x13a   :  { %v214_v29 = vpop.xlane.xlu1 %213  ;;  %v211_v35 = vpop.xlane.xlu0 %210  ;;  %v324_v18 = vrot.slane %v323_v63, 4  ;;  %v270_v2 = vrot.slane %v269_v20, 2  ;;  %v264_v54 = vmax.f32 %v262_v28, %v263_v47  ;;  %v319_v10 = vrot.slane %v318_v32, 2 }
 0x13b   :  { %888 = vrot.lane.b32.xlu0 %v885_v43, %s1022_s0  ;;  %v249_v56 = vsel %vm242_vm8, %v1406_v57, %v214_v29  ;;  %v248_v41 = vsel %vm242_vm8, %v1408_v15, %v211_v35  ;;  %v276_v9 = vmax.f32 %v274_v44, %v275_v27 }
 0x13c   :  { %v281_v45 = vsel %vm259_vm9, %v249_v56, -inf  ;;  %v325_v1 = vmax.f32 %v323_v63, %v324_v18  ;;  %v330_v38 = vsel %vm259_vm9, %v248_v41, -inf  ;;  %v271_v46 = vmax.f32 %v269_v20, %v270_v2 }
 0x13d   :  { %v282_v52 = vrot.slane %v281_v45, 4  ;;  %v331_v6 = vrot.slane %v330_v38, 4  ;;  %v265_v49 = vrot.slane %v264_v54, 1  ;;  %v1508_v8 = vmax.f32 %v318_v32, %v319_v10 }
 0x13e   :  { %v220_v59 = vpop.xlane.xlu1 %219  ;;  %v217_v60 = vpop.xlane.xlu0 %216  ;;  %v326_v57 = vrot.slane %v325_v1, 2  ;;  %v277_v17 = vrot.slane %v276_v9, 2  ;;  %v272_v23 = vrot.slane %v271_v46, 1 }
 0x13f   :  { %v250_v34 = vsel %vm242_vm8, %v1423_v53, %v217_v60  ;;  %v283_v40 = vmax.f32 %v281_v45, %v282_v52  ;;  %v251_v15 = vsel %vm242_vm8, %v1421_v51, %v220_v59  ;;  %v332_v22 = vmax.f32 %v330_v38, %v331_v6 }
 0x140   :  { %v337_v21 = vsel %vm259_vm9, %v250_v34, -inf  ;;  %v288_v53 = vsel %vm259_vm9, %v251_v15, -inf  ;;  %v327_v12 = vmax.f32 %v325_v1, %v326_v57  ;;  %v1518_v29 = vmax.f32 %v264_v54, %v265_v49 }
 0x141   :  { %v338_v31 = vrot.slane %v337_v21, 4  ;;  %v284_v61 = vrot.slane %v283_v40, 2  ;;  %v333_v43 = vrot.slane %v332_v22, 2  ;;  %v289_v20 = vrot.slane %v288_v53, 4 }
 0x142   :  { %v226_v11 = vpop.xlane.xlu1 %225  ;;  %v223_v13 = vpop.xlane.xlu0 %222  ;;  %v278_v35 = vmax.f32 %v276_v9, %v277_v17  ;;  %v321_v27 = vrot.slane %v1508_v8, 1  ;;  %v328_v18 = vrot.slane %v327_v12, 1  ;;  %v273_v59 = vmax.f32 %v271_v46, %v272_v23 }
 0x143   :  { %v253_v30 = vsel %vm242_vm8, %v1432_v36, %v226_v11  ;;  %v339_v16 = vmax.f32 %v337_v21, %v338_v31  ;;  %v252_v28 = vsel %vm242_vm8, %v1434_v4, %v223_v13  ;;  %v1515_v36 = vsel %vm39_vm0, %v960_v37, -inf }
 0x144   :  { %v295_v51 = vsel %vm259_vm9, %v253_v30, -inf  ;;  %v344_v63 = vsel %vm259_vm9, %v252_v28, -inf  ;;  %v285_v4 = vmax.f32 %v283_v40, %v284_v61  ;;  %v334_v60 = vmax.f32 %v332_v22, %v333_v43 }
 0x145   :  { %v340_v44 = vrot.slane %v339_v16, 2  ;;  %v296_v47 = vrot.slane %v295_v51, 4  ;;  %v345_v32 = vrot.slane %v344_v63, 4  ;;  %v290_v6 = vmax.f32 %v288_v53, %v289_v20 }
 0x146   :  { %v232_v0 = vpop.xlane.xlu1 %231  ;;  %v229_v33 = vpop.xlane.xlu0 %228  ;;  %v279_v10 = vrot.slane %v278_v35, 1  ;;  %v329_v57 = vmax.f32 %v327_v12, %v328_v18  ;;  %v286_v11 = vrot.slane %v285_v4, 1  ;;  %v335_v31 = vrot.slane %v334_v60, 1 }
 0x147   :  { %v255_v56 = vsel %vm242_vm8, %v1439_v24, %v232_v0  ;;  %v341_v41 = vmax.f32 %v339_v16, %v340_v44  ;;  %v346_v45 = vmax.f32 %v344_v63, %v345_v32  ;;  %v254_v1 = vsel %vm242_vm8, %v1441_v39, %v229_v33 }
 0x148   :  { %v302_v2 = vsel %vm259_vm9, %v255_v56, -inf  ;;  %v297_v9 = vmax.f32 %v295_v51, %v296_v47  ;;  %v351_v34 = vsel %vm259_vm9, %v254_v1, -inf  ;;  %v291_v30 = vrot.slane %v290_v6, 2 }
 0x149   :  { %v303_v54 = vrot.slane %v302_v2, 4  ;;  %v347_v40 = vrot.slane %v346_v45, 2  ;;  %v352_v21 = vrot.slane %v351_v34, 4  ;;  %v342_v13 = vrot.slane %v341_v41, 1 }
 0x14a   :  { %v238_v52 = vpop.xlane.xlu1 %237  ;;  %v235_v38 = vpop.xlane.xlu0 %234  ;;  %v298_v53 = vrot.slane %v297_v9, 2  ;;  %v287_v0 = vmax.f32 %v285_v4, %v286_v11  ;;  %v292_v43 = vmax.f32 %v290_v6, %v291_v30  ;;  %v336_v47 = vmax.f32 %v334_v60, %v335_v31 }
 0x14b   :  { %v257_v24 = vsel %vm242_vm8, %v1446_v62, %v238_v52  ;;  %v304_v15 = vmax.f32 %v302_v2, %v303_v54  ;;  %v256_v46 = vsel %vm242_vm8, %v1448_v5, %v235_v38  ;;  %v353_v17 = vmax.f32 %v351_v34, %v352_v21 }
 0x14c   :  { %v309_v39 = vsel %vm259_vm9, %v257_v24, -inf  ;;  %v358_v62 = vsel %vm259_vm9, %v256_v46, -inf  ;;  %v348_v16 = vmax.f32 %v346_v45, %v347_v40  ;;  %v343_v33 = vmax.f32 %v341_v41, %v342_v13  ;;  %v961_v13 = vld [vmem:[#allocation2 + $0x48] sm:$0xff] }
 0x14d   :  { %v305_v49 = vrot.slane %v304_v15, 2  ;;  %v310_v61 = vrot.slane %v309_v39, 4  ;;  %v354_v51 = vrot.slane %v353_v17, 2  ;;  %v359_v23 = vrot.slane %v358_v62, 4 }
 0x14e   :  { %v241_v22 = vpop.xlane.xlu0 %240  ;;  %v299_v32 = vmax.f32 %v297_v9, %v298_v53  ;;  %v322_v2 = vmax.f32 %v1508_v8, %v321_v27  ;;  %v349_v45 = vrot.slane %v348_v16, 1  ;;  %v376_v52 = vsel %vm372_vm14, %v287_v0, %v343_v33 }
 0x14f   :  { %v258_v12 = vsel %vm242_vm8, %v1453_v7, %v241_v22  ;;  %v311_v5 = vmax.f32 %v309_v39, %v310_v61  ;;  %v306_v20 = vmax.f32 %v304_v15, %v305_v49  ;;  %v355_v44 = vmax.f32 %v353_v17, %v354_v51  ;;  %v962_v51 = vld [vmem:[#allocation2 + $0x58] sm:$0xff] }
 0x150   :  { %v365_v28 = vsel %vm259_vm9, %v258_v12, -inf  ;;  %v360_v63 = vmax.f32 %v358_v62, %v359_v23  ;;  %v280_v7 = vmax.f32 %v278_v35, %v279_v10  ;;  %v374_v54 = vsel %vm372_vm14, %v273_v59, %v329_v57 }
 0x151   :  { %v366_v37 = vrot.slane %v365_v28, 4  ;;  %v312_v18 = vrot.slane %v311_v5, 2  ;;  %v356_v38 = vrot.slane %v355_v44, 1  ;;  %v293_v6 = vrot.slane %v292_v43, 1 }
 0x152   :  { %v361_v1 = vrot.slane %v360_v63, 2  ;;  %v307_v34 = vrot.slane %v306_v20, 1  ;;  %v375_v60 = vsel %vm372_vm14, %v280_v7, %v336_v47  ;;  %v300_v9 = vrot.slane %v299_v32, 1  ;;  %v964_v47 = vld [vmem:[#allocation2 + $0x78] sm:$0xff]  ;;  %v967_v7 = vld [vmem:[#allocation2 + $0x60] sm:$0xff] }
 0x153   :  { %v367_v56 = vmax.f32 %v365_v28, %v366_v37  ;;  %v313_v4 = vmax.f32 %v311_v5, %v312_v18  ;;  %v350_v21 = vmax.f32 %v348_v16, %v349_v45  ;;  %v389_v35 = vcombine.low %v374_v54, %v376_v52  ;;  %v963_v37 = vld [vmem:[#allocation2 + $0x68] sm:$0xff] }
 0x154   :  { %v362_v24 = vmax.f32 %v360_v63, %v361_v1  ;;  %v373_v27 = vsel %vm372_vm14, %v1518_v29, %v322_v2  ;;  %v357_v10 = vmax.f32 %v355_v44, %v356_v38  ;;  %v67_v59 = vsel %vm39_vm0, %v961_v13, -inf  ;;  %v966_v2 = vld [vmem:[#allocation2 + $0x50] sm:$0xff] }
 0x155   :  { %v368_v41 = vrot.slane %v367_v56, 2  ;;  %v314_v40 = vrot.slane %v313_v4, 1  ;;  %v294_v57 = vmax.f32 %v292_v43, %v293_v6  ;;  %v308_v39 = vmax.f32 %v306_v20, %v307_v34  ;;  %v968_v1 = vld [vmem:[#allocation2 + $0x70] sm:$0xff] }
 0x156   :  { %v363_v8 = vrot.slane %v362_v24, 1  ;;  %v381_v22 = vcombine.low %v373_v27, %v375_v60  ;;  %v301_v31 = vmax.f32 %v299_v32, %v300_v9  ;;  %v396_v29 = vrot.slane %v389_v35, %v1291_v3 }
 0x157   :  { %v369_v15 = vmax.f32 %v367_v56, %v368_v41  ;;  %v315_v30 = vmax.f32 %v313_v4, %v314_v40  ;;  %v377_v17 = vsel %vm372_vm14, %v294_v57, %v350_v21  ;;  %v73_v23 = vsel %vm39_vm0, %v962_v51, -inf }
 0x158   :  { %v364_v46 = vmax.f32 %v362_v24, %v363_v8  ;;  %v378_v61 = vsel %vm372_vm14, %v301_v31, %v357_v10  ;;  %v388_v12 = vrot.slane %v381_v22, %v1291_v3  ;;  %v79_v43 = vsel %vm39_vm0, %v963_v37, -inf }
 0x159   :  { %v370_v11 = vrot.slane %v369_v15, 1  ;;  %v85_v32 = vsel %vm39_vm0, %v964_v47, -inf  ;;  %v76_v45 = vsel %vm39_vm0, %v967_v7, -inf  ;;  %v82_v52 = vsel %vm39_vm0, %v968_v1, -inf }
 0x15a   :  { %65 = vmax.xlane.f32.xlu0 %v1515_v36  ;;  %v379_v53 = vsel %vm372_vm14, %v308_v39, %v364_v46  ;;  %v413_v33 = vcombine.low %v388_v12, %v396_v29 }
 0x15b   :  { %v371_v49 = vmax.f32 %v369_v15, %v370_v11  ;;  %v397_v62 = vcombine.low %v377_v17, %v379_v53 }
 0x15c   :  { %v420_v20 = vrot.slane %v413_v33, %v1461_v55 }
 0x15d   :  { %v380_v36 = vsel %vm372_vm14, %v315_v30, %v371_v49  ;;  %v404_v28 = vrot.slane %v397_v62, %v1291_v3 }
 0x15e   :  { %68 = vmax.xlane.f32.xlu0 %v67_v59  ;;  %v405_v16 = vcombine.low %v378_v61, %v380_v36 }
 0x160   :  { %v412_v0 = vrot.slane %v405_v16, %v1291_v3  ;;  %v965_v3 = vld [vmem:[#allocation2 + $0x38] sm:$0xff] }
 0x161   :  { %v61_v56 = vsel %vm39_vm0, %v965_v3, -inf }
 0x162   :  { %74 = vmax.xlane.f32.xlu0 %v73_v23  ;;  %v421_v5 = vcombine.low %v404_v28, %v412_v0 }
 0x164   :  { %v428_v44 = vrot.slane %v421_v5, %v1461_v55  ;;  %v70_v55 = vsel %vm39_vm0, %v966_v2, -inf  ;;  %vm911_vm0 = vcmask 1043459  }
 0x166   :  { %80 = vmax.xlane.f32.xlu0 %v79_v43  ;;  %v430_v63 = vcombine.high %v420_v20, %v428_v44  ;;  %v429_v18 = vcombine.low %v420_v20, %v428_v44 }
 0x168   :  { %432 = vrot.lane.b32.xlu1 %v430_v63, %s1023_s20 }
 0x16a   :  { %86 = vmax.xlane.f32.xlu0 %v85_v32 }
 0x16c   :  { %892 = vrot.lane.b32.xlu1 %v886_v50, %s1024_s21 }
 0x190   :  { %62 = vmax.xlane.f32.xlu1 %v61_v56 }
 0x194   :  { %71 = vmax.xlane.f32.xlu1 %v70_v55 }
 0x198   :  { %77 = vmax.xlane.f32.xlu1 %v76_v45 }
 0x19c   :  { %83 = vmax.xlane.f32.xlu1 %v82_v52 }
 0x1ad   :  { %v889_v42 = vpop.permute.xlu0 %888 }
 0x1ae   :  { %v896_v50 = vsel %vm895_vm2, %v884_v26, %v889_v42 }
 0x1da   :  { %v433_v38 = vpop.permute.xlu1 %432 }
 0x1db   :  { %v435_v14 = vsel %vm259_vm9, %v429_v18, %v433_v38  ;;  %vm932_vm9 = vcmask 113664  }
 0x1dc   :  { %923 = vrot.lane.b32.xlu1 %v435_v14, %s1025_s22 }
 0x1de   :  { %v893_v4 = vpop.permute.xlu1 %892 }
 0x1df   :  { %v898_v41 = vsel %vm897_vm3, %v896_v50, %v893_v4 }
 0x1e0   :  { %927 = vrot.lane.b32.xlu0 %v898_v41, %s1026_s23 }
 0x1e7   :  { %v66_v54 = vpop.xlane.xlu0 %65 }
 0x1eb   :  { %v69_v34 = vpop.xlane.xlu0 %68 }
 0x1ec   :  { %v116_v21 = vmax.f32 %v66_v54, %v69_v34 }
 0x1ee   :  { %v117_v26 = vrot.slane %v116_v21, 4 }
 0x1ef   :  { %v75_v60 = vpop.xlane.xlu0 %74 }
 0x1f0   :  { %v118_v39 = vmax.f32 %v116_v21, %v117_v26 }
 0x1f2   :  { %v119_v49 = vrot.slane %v118_v39, 2 }
 0x1f3   :  { %v81_v40 = vpop.xlane.xlu0 %80 }
 0x1f4   :  { %v120_v61 = vmax.f32 %v118_v39, %v119_v49 }
 0x1f6   :  { %v121_v51 = vrot.slane %v120_v61, 1 }
 0x1f7   :  { %v87_v35 = vpop.xlane.xlu0 %86 }
 0x1f8   :  { %v122_v5 = vmax.f32 %v120_v61, %v121_v51 }
 0x21d   :  { %v63_v6 = vpop.xlane.xlu1 %62 }
 0x21e   :  { %v109_v15 = vmax.f32 %v1238_v58, %v63_v6 }
 0x220   :  { %v110_v27 = vrot.slane %v109_v15, 4 }
 0x221   :  { %v72_v24 = vpop.xlane.xlu1 %71 }
 0x222   :  { %v123_v10 = vmax.f32 %v72_v24, %v75_v60  ;;  %v111_v11 = vmax.f32 %v109_v15, %v110_v27 }
 0x224   :  { %v124_v13 = vrot.slane %v123_v10, 4  ;;  %v112_v46 = vrot.slane %v111_v11, 2 }
 0x225   :  { %v78_v9 = vpop.xlane.xlu1 %77 }
 0x226   :  { %v130_v48 = vmax.f32 %v78_v9, %v81_v40  ;;  %v125_v22 = vmax.f32 %v123_v10, %v124_v13  ;;  %v113_v17 = vmax.f32 %v111_v11, %v112_v46 }
 0x228   :  { %v131_v59 = vrot.slane %v130_v48, 4  ;;  %v126_v58 = vrot.slane %v125_v22, 2  ;;  %v114_v36 = vrot.slane %v113_v17, 1 }
 0x229   :  { %v84_v8 = vpop.xlane.xlu1 %83 }
 0x22a   :  { %v137_v25 = vmax.f32 %v84_v8, %v87_v35  ;;  %v132_v31 = vmax.f32 %v130_v48, %v131_v59  ;;  %v127_v62 = vmax.f32 %v125_v22, %v126_v58  ;;  %v115_v23 = vmax.f32 %v113_v17, %v114_v36 }
 0x22c   :  { %v138_v57 = vrot.slane %v137_v25, 4  ;;  %v133_v53 = vrot.slane %v132_v31, 2  ;;  %v128_v28 = vrot.slane %v127_v62, 1  ;;  %v912_v37 = vsel %vm911_vm0, %v115_v23, %v1252_v19 }
 0x22d   :  { %v914_v63 = vsel %vm913_vm4, %v122_v5, %v912_v37 }
 0x22e   :  { %v139_v30 = vmax.f32 %v137_v25, %v138_v57  ;;  %v134_v12 = vmax.f32 %v132_v31, %v133_v53  ;;  %v129_v43 = vmax.f32 %v127_v62, %v128_v28 }
 0x230   :  { %v140_v29 = vrot.slane %v139_v30, 2  ;;  %v135_v0 = vrot.slane %v134_v12, 1  ;;  %v916_v32 = vsel %vm915_vm5, %v129_v43, %v914_v63 }
 0x232   :  { %v141_v16 = vmax.f32 %v139_v30, %v140_v29  ;;  %v136_v20 = vmax.f32 %v134_v12, %v135_v0 }
 0x234   :  { %v142_v33 = vrot.slane %v141_v16, 1  ;;  %v918_v18 = vsel %vm917_vm6, %v136_v20, %v916_v32 }
 0x236   :  { %v143_v44 = vmax.f32 %v141_v16, %v142_v33 }
 0x238   :  { %v920_v3 = vsel %vm919_vm7, %v143_v44, %v918_v18 }
 0x24e   :  { %v924_v47 = vpop.permute.xlu1 %923 }
 0x24f   :  { %v930_v56 = vsel %vm242_vm8, %v920_v3, %v924_v47 }
 0x252   :  { %v928_v2 = vpop.permute.xlu0 %927 }
 0x253   :  { %v931_v19 = vsel %vm436_vm1, %v930_v56, %v928_v2 }
 0x254   :  { %933 = vst.msk [vmem:[#allocation5] sm:$0xff] %vm932_vm9, %v931_v19 }
 0x255   :  { %1002 = shalt.err (!%p999_p12)
}
 0x256   :  { %s1003_s29 = scalar_lea.hbm %s1585_s1, 128 }
 0x257   :  { %p1004_p13 = scmp.ne.s32.totalorder %s1585_s1, %s1003_s29  ;;  %p1007_p0 = scmp.lt.u32.totalorder %s1003_s29, %s1585_s1 }
 0x259   :  { %p1009_p1 = pnand %p1007_p0, %p1004_p13 }
 0x25b   :  { %1012 = shalt.err (!%p1009_p1)
}
 0x25c   :  { %943 = dma.vmem_to_hbm [thread:$0]  %s941_s25, 128, %s1585_s1, [#allocation4]  }
 0x25d   :  { %1015 = dma.done.wait [#allocation4], 128  }
 0x25e   :  { %1016 = vsyncadd [#allocation4], 4294967168 }
 0x25f   :  { %947 = vsyncpa [#allocation3], 1 }
 0x260   :  { %948 = vsyncpa [#allocation4], 1 }

</bundles_post_ra>
